<compile_context>
chip_gen: v7x
topology: tpu7x:2x2x1
jax: 0.10.0
libtpu: 0.0.40
codegen_flags: <defaults>
</compile_context>

<pallas_src>
import jax
import jax.numpy as jnp
from jax.experimental import pallas as pl
from jax.experimental.pallas import tpu as pltpu


def _round_up(x: int, m: int) -> int:
    return (x + m - 1) // m * m


def _vmem_budget():
    """Return (per-block byte budget, scoped VMEM limit) for this TPU gen."""
    try:
        phys = int(pltpu.get_tpu_info().vmem_capacity_bytes)
    except Exception:
        phys = None
    if phys is None:
        # Unknown chip: 4 MiB blocks (=> 16 MiB double-buffered in+out) and a
        # 32 MiB scoped limit are safe on v5e/v6e (128 MiB) and v7x (64 MiB).
        return 4 << 20, 32 << 20
    if phys >= (96 << 20):          # v5e / v6e: 128 MiB physical VMEM
        return 8 << 20, 64 << 20
    return 4 << 20, 28 << 20        # v7x: 64 MiB physical per TensorCore


def _pick_blocks(N, g, cpg, H, W, itemsize, budget_bytes):
    """Pick (n_blk, cpg_blk) so the padded VMEM block stays under budget."""
    sublane = max(8, 32 // itemsize)                  # f32: 8, bf16: 16, int8: 32
    padded_plane = _round_up(H, sublane) * _round_up(W, 128) * itemsize
    group_slab = g * padded_plane                     # one (g, 1, H, W) slab

    cpg_blk = 1                                       # channel slab first (long DMA runs)
    for d in range(1, cpg + 1):
        if cpg % d == 0 and d * group_slab <= budget_bytes:
            cpg_blk = d
    n_blk = 1                                         # then batch blocking
    for d in range(1, N + 1):
        if N % d == 0 and d * cpg_blk * group_slab <= budget_bytes:
            n_blk = d
    block_bytes = n_blk * cpg_blk * group_slab
    return n_blk, cpg_blk, block_bytes


def _shuffle_kernel(x_ref, o_ref):
    # x_ref: (n_blk, g, cpg_blk, H, W)  ->  o_ref: (n_blk, cpg_blk, g, H, W)
    # Direct indexed slab assignments (no reshape). Trailing (H, W) dims are
    # untouched, so each statement is a pure tile copy.
    g = x_ref.shape[1]
    for i in range(g):
        o_ref[:, :, i] = x_ref[:, i]


def channel_shuffle(x: jax.Array, groups: int, *,
                    max_block_bytes: int | None = None) -> jax.Array:
    """Pallas TPU implementation of ChannelShuffle.forward for NCHW input."""
    if groups == 1:
        return x

    N, C, H, W = x.shape
    assert C % groups == 0, "channels must be divisible by groups"
    g = groups
    cpg = C // g
    itemsize = jnp.dtype(x.dtype).itemsize

    budget, vmem_limit = _vmem_budget()
    if max_block_bytes is not None:
        budget = max_block_bytes
    n_blk, cpg_blk, block_bytes = _pick_blocks(N, g, cpg, H, W, itemsize, budget)
    # in + out blocks, each double-buffered -> 4x block bytes, plus slack.
    vmem_limit = max(vmem_limit, 4 * block_bytes + (2 << 20))

    # Metadata-only reshape (contiguous split of the channel dim).
    x5 = x.reshape(N, g, cpg, H, W)

    out5 = pl.pallas_call(
        _shuffle_kernel,
        out_shape=jax.ShapeDtypeStruct((N, cpg, g, H, W), x.dtype),
        grid_spec=pltpu.PrefetchScalarGridSpec(
            num_scalar_prefetch=0,
            grid=(N // n_blk, cpg // cpg_blk),
            in_specs=[pl.BlockSpec((n_blk, g, cpg_blk, H, W),
                                   lambda nb, jb: (nb, 0, jb, 0, 0))],
            out_specs=pl.BlockSpec((n_blk, cpg_blk, g, H, W),
                                   lambda nb, jb: (nb, jb, 0, 0, 0)),
        ),
        compiler_params=pltpu.CompilerParams(
            # Independent copies on every axis (lets megacore shard the grid).
            dimension_semantics=("parallel", "parallel"),
            vmem_limit_bytes=int(vmem_limit),
        ),
        cost_estimate=pl.CostEstimate(
            flops=0, transcendentals=0,
            bytes_accessed=2 * N * C * H * W * itemsize),
    )(x5)

    # Metadata-only merge of (cpg, g) back into C.
    return out5.reshape(N, C, H, W)


def channel_shuffle_ref(x: jax.Array, groups: int) -> jax.Array:
    """Pure-JAX reference mirroring the PyTorch view/permute/view."""
    if groups == 1:
        return x
    N, C, H, W = x.shape
    cpg = C // groups
    out = x.reshape(N, groups, cpg, H, W)
    out = jnp.transpose(out, (0, 2, 1, 3, 4))
    return out.reshape(N, C, H, W)


if __name__ == "__main__":
    key = jax.random.PRNGKey(0)
    N, C, H, W = 2, 4, 16, 16
    groups = 2  # groups=1 is a pure passthrough; use 2 to exercise the shuffle

    x = jax.random.normal(key, (N, C, H, W), dtype=jnp.float32)

    out = jax.block_until_ready(channel_shuffle(x, groups))
    ref = channel_shuffle_ref(x, groups)
    assert out.shape == x.shape and out.dtype == x.dtype
    assert jnp.array_equal(out, ref), "Pallas ChannelShuffle mismatch vs reference"

    # groups=1 identity path (matches the PyTorch module's early return).
    out1 = jax.block_until_ready(channel_shuffle(x, 1))
    assert jnp.array_equal(out1, x)

    # Exercise channel sub-blocking with tiny forced VMEM budgets and an odd,
    # non-(8,128)-aligned spatial shape (7x7).
    x2 = jax.random.normal(jax.random.PRNGKey(1), (2, 12, 7, 7), dtype=jnp.float32)
    ref2 = channel_shuffle_ref(x2, 3)
    out2a = jax.block_until_ready(channel_shuffle(x2, 3, max_block_bytes=8 * 1024))
    assert jnp.array_equal(out2a, ref2), "mismatch (cpg_blk=1 sub-blocked path)"
    out2b = jax.block_until_ready(channel_shuffle(x2, 3, max_block_bytes=40 * 1024))
    assert jnp.array_equal(out2b, ref2), "mismatch (partial cpg_blk path)"

    print("KERNEL_OK")
</pallas_src>

<mosaic_0001>
module attributes {stable_mosaic.version = 11 : i64} {
  func.func @_shuffle_kernel(%arg0: i32, %arg1: i32, %arg2: memref<2x2x2x16x16xf32, #tpu.memory_space<vmem>>, %arg3: memref<2x2x2x16x16xf32, #tpu.memory_space<vmem>>) attributes {dimension_semantics = [#tpu.dimension_semantics<parallel>, #tpu.dimension_semantics<parallel>], iteration_bounds = array<i64: 1, 1>, scalar_prefetch = 0 : i64, scratch_operands = 0 : i64, tpu.core_type = #tpu.core_type<tc>, window_params = [{transform_indices = @transform_0, window_bounds = array<i64: 2, 2, 2, 16, 16>}, {transform_indices = @transform_1, window_bounds = array<i64: 2, 2, 2, 16, 16>}]} {
    %c0 = arith.constant 0 : index
    %c0_0 = arith.constant 0 : index
    %c0_1 = arith.constant 0 : index
    %c0_2 = arith.constant 0 : index
    %c0_3 = arith.constant 0 : index
    %0 = vector.load %arg2[%c0, %c0_0, %c0_1, %c0_2, %c0_3] : memref<2x2x2x16x16xf32, #tpu.memory_space<vmem>>, vector<2x1x2x16x16xf32>
    %1 = vector.shape_cast %0 : vector<2x1x2x16x16xf32> to vector<2x2x16x16xf32>
    %c0_4 = arith.constant 0 : index
    %c0_5 = arith.constant 0 : index
    %c0_6 = arith.constant 0 : index
    %c0_7 = arith.constant 0 : index
    %c0_8 = arith.constant 0 : index
    %2 = vector.load %arg3[%c0_4, %c0_5, %c0_6, %c0_7, %c0_8] : memref<2x2x2x16x16xf32, #tpu.memory_space<vmem>>, vector<2x2x1x16x16xf32>
    %3 = vector.shape_cast %2 : vector<2x2x1x16x16xf32> to vector<2x2x16x16xf32>
    %4 = vector.shape_cast %1 : vector<2x2x16x16xf32> to vector<2x2x1x16x16xf32>
    tpu.vector_store %arg3[%c0_4, %c0_5, %c0_6, %c0_7, %c0_8], %4 {strides = array<i32>} : memref<2x2x2x16x16xf32, #tpu.memory_space<vmem>>, vector<2x2x1x16x16xf32>,
    %c0_9 = arith.constant 0 : index
    %c1 = arith.constant 1 : index
    %c0_10 = arith.constant 0 : index
    %c0_11 = arith.constant 0 : index
    %c0_12 = arith.constant 0 : index
    %5 = vector.load %arg2[%c0_9, %c1, %c0_10, %c0_11, %c0_12] : memref<2x2x2x16x16xf32, #tpu.memory_space<vmem>>, vector<2x1x2x16x16xf32>
    %6 = vector.shape_cast %5 : vector<2x1x2x16x16xf32> to vector<2x2x16x16xf32>
    %c0_13 = arith.constant 0 : index
    %c0_14 = arith.constant 0 : index
    %c1_15 = arith.constant 1 : index
    %c0_16 = arith.constant 0 : index
    %c0_17 = arith.constant 0 : index
    %7 = vector.load %arg3[%c0_13, %c0_14, %c1_15, %c0_16, %c0_17] : memref<2x2x2x16x16xf32, #tpu.memory_space<vmem>>, vector<2x2x1x16x16xf32>
    %8 = vector.shape_cast %7 : vector<2x2x1x16x16xf32> to vector<2x2x16x16xf32>
    %9 = vector.shape_cast %6 : vector<2x2x16x16xf32> to vector<2x2x1x16x16xf32>
    tpu.vector_store %arg3[%c0_13, %c0_14, %c1_15, %c0_16, %c0_17], %9 {strides = array<i32>} : memref<2x2x2x16x16xf32, #tpu.memory_space<vmem>>, vector<2x2x1x16x16xf32>,
    return
  }
  func.func @transform_0(%arg0: i32, %arg1: i32) -> (i32, i32, i32, i32, i32) {
    %c0_i32 = arith.constant 0 : i32
    %c0_i32_0 = arith.constant 0 : i32
    %c0_i32_1 = arith.constant 0 : i32
    %c0_i32_2 = arith.constant 0 : i32
    return %arg0, %c0_i32, %arg1, %c0_i32_0, %c0_i32_1 : i32, i32, i32, i32, i32
  }
  func.func @transform_1(%arg0: i32, %arg1: i32) -> (i32, i32, i32, i32, i32) {
    %c0_i32 = arith.constant 0 : i32
    %c0_i32_0 = arith.constant 0 : i32
    %c0_i32_1 = arith.constant 0 : i32
    %c0_i32_2 = arith.constant 0 : i32
    return %arg0, %arg1, %c0_i32, %c0_i32_0, %c0_i32_1 : i32, i32, i32, i32, i32
  }
}

</mosaic_0001>

<bundles_post_ra>
// kernel: tpu_custom_call.1
= control target key start
LH: loop header
LB: loop body
LE: loop exit
PB: predicated region body
PF: predicated region fallthrough
CT: control target
= control target key end

     0   :  { %6 = vsyncpa [#allocation3], 0  ;;  %s187_s0 = inlined_call_operand.hbm [shape: f32[2,2,2,16,16], index: 0, kind: input, shape index: {}]   ;;  %s188_s1 = inlined_call_operand.hbm [shape: f32[2,2,2,16,16], index: 1, kind: output, shape index: {}]  }
   0x1   :  { %7 = vsyncpa [#allocation4], 0  ;;  %s127_s6 = smov [#allocation2]   ;;  %s79_s10 = scalar_lea.hbm %s187_s0, 2048 }
   0x2   :  { %s13_s7 = sshll.u32 %s127_s6, 4  ;;  %p80_p0 = scmp.ne.s32.totalorder %s187_s0, %s79_s10  ;;  %s14_s7 = int_to_ptr.vmem [resolvable:$true] %s13_s7 }
   0x3   :  { %p83_p1 = scmp.lt.u32.totalorder %s79_s10, %s187_s0 }
   0x5   :  { %p85_p2 = pnand %p83_p1, %p80_p0 }
   0x7   :  { %88 = shalt.err (!%p85_p2)
}
   0x8   :  { %s89_s15 = scalar_lea.vmem %s14_s7, 2048  ;;  %p94_p4 = scmp.lt.s32.totalorder %s14_s7, %s14_s7 }
   0x9   :  { %p90_p3 = scmp.ne.s32.totalorder %s14_s7, %s89_s15  ;;  %p95_p5 = scmp.lt.s32.totalorder %s89_s15, %s89_s15 }
   0xb   :  { %p96_p6 = por %p95_p5, %p94_p4 }
   0xd   :  { %p97_p7 = pnand %p96_p6, %p90_p3 }
   0xf   :  { %100 = shalt.err (!%p97_p7)
}
  0x10   :  { %s128_s16 = smov 128   ;;  %s129_s17 = smov 8  }
  0x11   :  { %19 = dma.hbm_to_vmem [thread:$0]  %s187_s0, 2048, %s14_s7, [#allocation3], %s128_s16, %s128_s16, %s129_s17  }
  0x12   :  { %123 = dma.done.wait [#allocation3], 2048  }
  0x13   :  { %124 = vsyncadd [#allocation3], 4294965248  ;;  %vm31_vm0 = vcmask 130048   ;;  %v23_v0 = vld [vmem:[#allocation2] sm:$0xff]  ;;  %v24_v1 = vld [vmem:[#allocation2 + $0x8] sm:$0xff]  ;;  %s130_s20 = smov [#allocation5]  }
  0x14   :  { %v25_v2 = vld [vmem:[#allocation2 + $0x10] sm:$0xff]  ;;  %32 = vst.msk [vmem:[#allocation5] sm:$0xff] %vm31_vm0, %v23_v0  ;;  %33 = vst.msk [vmem:[#allocation5 + $0x8] sm:$0xff] %vm31_vm0, %v24_v1  ;;  %v26_v3 = vld [vmem:[#allocation2 + $0x18] sm:$0xff]  ;;  %s63_s21 = sshll.u32 %s130_s20, 4  ;;  %s64_s21 = int_to_ptr.vmem [resolvable:$true] %s63_s21 }
  0x15   :  { %34 = vst.msk [vmem:[#allocation5 + $0x20] sm:$0xff] %vm31_vm0, %v25_v2  ;;  %v27_v4 = vld [vmem:[#allocation2 + $0x40] sm:$0xff]  ;;  %v28_v5 = vld [vmem:[#allocation2 + $0x48] sm:$0xff]  ;;  %35 = vst.msk [vmem:[#allocation5 + $0x28] sm:$0xff] %vm31_vm0, %v26_v3  ;;  %s101_s0 = scalar_lea.vmem %s64_s21, 2048  ;;  %p106_p9 = scmp.lt.s32.totalorder %s64_s21, %s64_s21 }
  0x16   :  { %36 = vst.msk [vmem:[#allocation5 + $0x40] sm:$0xff] %vm31_vm0, %v27_v4  ;;  %37 = vst.msk [vmem:[#allocation5 + $0x48] sm:$0xff] %vm31_vm0, %v28_v5  ;;  %v29_v6 = vld [vmem:[#allocation2 + $0x50] sm:$0xff]  ;;  %v30_v7 = vld [vmem:[#allocation2 + $0x58] sm:$0xff]  ;;  %p102_p8 = scmp.ne.s32.totalorder %s64_s21, %s101_s0  ;;  %p107_p10 = scmp.lt.s32.totalorder %s101_s0, %s101_s0 }
  0x17   :  { %v41_v8 = vld [vmem:[#allocation2 + $0x20] sm:$0xff]  ;;  %38 = vst.msk [vmem:[#allocation5 + $0x60] sm:$0xff] %vm31_vm0, %v29_v6  ;;  %39 = vst.msk [vmem:[#allocation5 + $0x68] sm:$0xff] %vm31_vm0, %v30_v7  ;;  %v42_v9 = vld [vmem:[#allocation2 + $0x28] sm:$0xff] }
  0x18   :  { %50 = vst.msk [vmem:[#allocation5 + $0x10] sm:$0xff] %vm31_vm0, %v41_v8  ;;  %v43_v10 = vld [vmem:[#allocation2 + $0x30] sm:$0xff]  ;;  %v44_v11 = vld [vmem:[#allocation2 + $0x38] sm:$0xff]  ;;  %51 = vst.msk [vmem:[#allocation5 + $0x18] sm:$0xff] %vm31_vm0, %v42_v9  ;;  %p108_p11 = por %p107_p10, %p106_p9 }
  0x19   :  { %52 = vst.msk [vmem:[#allocation5 + $0x30] sm:$0xff] %vm31_vm0, %v43_v10  ;;  %53 = vst.msk [vmem:[#allocation5 + $0x38] sm:$0xff] %vm31_vm0, %v44_v11  ;;  %v45_v12 = vld [vmem:[#allocation2 + $0x60] sm:$0xff]  ;;  %v46_v13 = vld [vmem:[#allocation2 + $0x68] sm:$0xff] }
  0x1a   :  { %v47_v14 = vld [vmem:[#allocation2 + $0x70] sm:$0xff]  ;;  %54 = vst.msk [vmem:[#allocation5 + $0x50] sm:$0xff] %vm31_vm0, %v45_v12  ;;  %55 = vst.msk [vmem:[#allocation5 + $0x58] sm:$0xff] %vm31_vm0, %v46_v13  ;;  %v48_v15 = vld [vmem:[#allocation2 + $0x78] sm:$0xff]  ;;  %p109_p12 = pnand %p108_p11, %p102_p8 }
  0x1b   :  { %56 = vst.msk [vmem:[#allocation5 + $0x70] sm:$0xff] %vm31_vm0, %v47_v14  ;;  %57 = vst.msk [vmem:[#allocation5 + $0x78] sm:$0xff] %vm31_vm0, %v48_v15 }
  0x1c   :  { %112 = shalt.err (!%p109_p12)
}
  0x1d   :  { %s113_s24 = scalar_lea.hbm %s188_s1, 2048 }
  0x1e   :  { %p114_p13 = scmp.ne.s32.totalorder %s188_s1, %s113_s24  ;;  %p117_p0 = scmp.lt.u32.totalorder %s113_s24, %s188_s1 }
  0x20   :  { %p119_p1 = pnand %p117_p0, %p114_p13 }
  0x22   :  { %122 = shalt.err (!%p119_p1)
}
  0x23   :  { %69 = dma.vmem_to_hbm [thread:$0]  %s64_s21, 2048, %s188_s1, [#allocation4], %s128_s16, %s128_s16, %s129_s17  }
  0x24   :  { %125 = dma.done.wait [#allocation4], 2048  }
  0x25   :  { %126 = vsyncadd [#allocation4], 4294965248 }
  0x26   :  { %73 = vsyncpa [#allocation3], 1 }
  0x27   :  { %74 = vsyncpa [#allocation4], 1 }

</bundles_post_ra>
